<compile_context>
chip_gen: v6e
topology: v6e:2x2x1
jax: 0.10.0
libtpu: 0.0.40
codegen_flags: <defaults>
</compile_context>

<pallas_src>
import functools

import jax
import jax.numpy as jnp
from jax.experimental import pallas as pl
from jax.experimental.pallas import tpu as pltpu

_LANES = 128


def _chip_config():
    """Returns (tile_bytes, vmem_limit_bytes_or_None, is_v5e)."""
    try:
        kind = jax.devices()[0].device_kind.lower()
    except Exception:
        kind = ""
    is_v5e = ("v5e" in kind) or ("v5 lite" in kind) or ("v5lite" in kind)
    if is_v5e:
        # v5e: ~0.8 TB/s HBM, 16 MiB default scoped VMEM.  2 MiB tiles ->
        # double-buffered (in+out) footprint 8 MiB; no limit raise needed.
        return 2 * 1024 * 1024, None, True
    # v6e / v7x (and unknown): 4 MiB tiles -> 16 MiB footprint.  Pin the scoped
    # VMEM limit to 32 MiB (== v6e/v7x default, well under v7x's 64 MiB physical)
    # so the config is safe even if the runtime default is lower.
    return 4 * 1024 * 1024, 32 * 1024 * 1024, False


def _make_lrelu_kernel(c, compute_dtype):
    c = float(c)
    use_max = 0.0 <= c <= 1.0  # leaky_relu(x, c) == max(x, c*x) iff 0 <= c <= 1

    def kernel(x_ref, o_ref):
        x = x_ref[...].astype(compute_dtype)
        if use_max:
            y = jnp.maximum(x, x * c)           # leaky_relu, no compare+select
        else:
            y = jnp.where(x >= 0, x, x * c)     # general slope fallback
        o_ref[...] = jnp.clip(y, -3.0, 3.0).astype(o_ref.dtype)

    return kernel


@functools.partial(jax.jit, static_argnums=(1,))
def _lrelu_impl(x, c):
    orig_shape = x.shape
    dtype = x.dtype
    if not jnp.issubdtype(dtype, jnp.floating):
        raise TypeError(f"LReLU expects a floating dtype, got {dtype}")

    total = x.size
    if total == 0:
        return x

    itemsize = jnp.dtype(dtype).itemsize
    tile_bytes, vmem_limit, is_v5e = _chip_config()

    # bf16 VALUs exist on v6e/v7x -> compute natively in bf16 there; otherwise f32.
    if dtype == jnp.bfloat16 and not is_v5e:
        compute_dtype = jnp.bfloat16
    else:
        compute_dtype = jnp.float32
    kernel = _make_lrelu_kernel(c, compute_dtype)

    # TODO(synk): if an xprof trace on v7x shows only one TensorCore active,
    # switch the row axis to pltpu.CORE_PARALLEL to use both TCs' HBM bandwidth.
    dim_sem = ("parallel",)

    x_flat = x.reshape(-1)

    if total % _LANES == 0:
        # ---- Aligned fast path: lane-dense (rows, W) slab, zero extra copies.
        candidates = [w for w in (4096, 2048, 1024, 512, 256, 128) if total % w == 0]
        wide = [w for w in candidates if total // w >= 8]
        W = wide[0] if wide else candidates[-1]   # widest W that still fills sublanes
        rows = total // W

        sub = max(8, 32 // itemsize)              # sublane multiple (8 f32 / 16 bf16)
        max_rows = max(sub, tile_bytes // (W * itemsize))

        if rows <= sub:
            tile_rows = rows                      # tiny tensor, single block
        elif rows <= max_rows:
            # Whole slab fits one tile: still split ~4 ways so the pipeline
            # overlaps DMA-in / compute / DMA-out instead of grid=(1,).
            t = pl.cdiv(rows, 4)
            t = ((t + sub - 1) // sub) * sub
            tile_rows = min(t, rows)
        else:
            tile_rows = (max_rows // sub) * sub

        grid = (pl.cdiv(rows, tile_rows),)

        out = pl.pallas_call(
            kernel,
            out_shape=jax.ShapeDtypeStruct((rows, W), dtype),
            grid=grid,
            in_specs=[pl.BlockSpec((tile_rows, W), lambda i: (i, 0))],
            out_specs=pl.BlockSpec((tile_rows, W), lambda i: (i, 0)),
            compiler_params=pltpu.CompilerParams(
                dimension_semantics=dim_sem,
                vmem_limit_bytes=vmem_limit,
            ),
        )(x_flat.reshape(rows, W))
        return out.reshape(orig_shape)

    # ---- Ragged path (size % 128 != 0): single pallas_call on the free
    # (1, total) view.  The partial last block's store is masked by Pallas, so
    # there is no slice / concatenate (no extra full-tensor HBM traffic).
    x2d = x_flat.reshape(1, total)
    # ~512 KiB logical per block; a (1, K) VMEM buffer may be sublane-padded up
    # to 8x, so worst-case footprint is 2 arrays * 2 buffers * 4 MiB = 16 MiB.
    k_elems = max(_LANES, ((512 * 1024) // itemsize) // _LANES * _LANES)
    k_elems = min(k_elems, pl.cdiv(total, _LANES) * _LANES)
    grid = (pl.cdiv(total, k_elems),)

    out = pl.pallas_call(
        kernel,
        out_shape=jax.ShapeDtypeStruct((1, total), dtype),
        grid=grid,
        in_specs=[pl.BlockSpec((1, k_elems), lambda i: (0, i))],
        out_specs=pl.BlockSpec((1, k_elems), lambda i: (0, i)),
        compiler_params=pltpu.CompilerParams(
            dimension_semantics=dim_sem,
            vmem_limit_bytes=32 * 1024 * 1024,
        ),
    )(x2d)
    return out.reshape(orig_shape)


def lrelu(x, c=1.0 / 3):
    """Clamped leaky-ReLU matching torch.clamp(F.leaky_relu(x, c), -3, 3)."""
    return _lrelu_impl(x, float(c))


if __name__ == "__main__":
    key = jax.random.PRNGKey(0)
    k0, k1 = jax.random.split(key)

    # Small NCHW activation: batch=2, C=4, 16x16; scaled to exercise the clamp.
    x = jax.random.normal(k0, (2, 4, 16, 16), dtype=jnp.float32) * 5.0
    y = jax.block_until_ready(lrelu(x, c=1.0 / 3))
    ref = jnp.clip(jnp.where(x >= 0, x, x * (1.0 / 3)), -3.0, 3.0)
    assert y.shape == x.shape and y.dtype == x.dtype
    assert jnp.allclose(y, ref, atol=1e-6), "aligned-path mismatch vs reference"

    # Ragged size (7*37 = 259 elements, not a multiple of 128) — handled
    # entirely in-kernel, no slice/concat copies.
    x2 = jax.random.normal(k1, (7, 37), dtype=jnp.float32) * 5.0
    y2 = jax.block_until_ready(lrelu(x2))
    ref2 = jnp.clip(jnp.where(x2 >= 0, x2, x2 * (1.0 / 3)), -3.0, 3.0)
    assert y2.shape == x2.shape and y2.dtype == x2.dtype
    assert jnp.allclose(y2, ref2, atol=1e-6), "ragged-path mismatch vs reference"

    print("KERNEL_OK")
</pallas_src>

<mosaic_0001>
module attributes {stable_mosaic.version = 11 : i64} {
  func.func @kernel(%arg0: i32, %arg1: memref<8x256xf32, #tpu.memory_space<vmem>>, %arg2: memref<8x256xf32, #tpu.memory_space<vmem>>) attributes {dimension_semantics = [#tpu.dimension_semantics<parallel>], iteration_bounds = array<i64: 1>, scalar_prefetch = 0 : i64, scratch_operands = 0 : i64, tpu.core_type = #tpu.core_type<tc>, window_params = [{transform_indices = @transform_0, window_bounds = array<i64: 8, 256>}, {transform_indices = @transform_1, window_bounds = array<i64: 8, 256>}]} {
    %c0 = arith.constant 0 : index
    %c0_0 = arith.constant 0 : index
    %0 = vector.load %arg1[%c0, %c0_0] : memref<8x256xf32, #tpu.memory_space<vmem>>, vector<8x256xf32>
    %cst = arith.constant 0.333333343 : f32
    %1 = vector.broadcast %cst : f32 to vector<8x256xf32>
    %2 = arith.mulf %0, %1 : vector<8x256xf32>
    %3 = arith.maximumf %0, %2 : vector<8x256xf32>
    %cst_1 = arith.constant -3.000000e+00 : f32
    %cst_2 = arith.constant 3.000000e+00 : f32
    %4 = vector.broadcast %cst_1 : f32 to vector<8x256xf32>
    %5 = arith.maximumf %4, %3 : vector<8x256xf32>
    %6 = vector.broadcast %cst_2 : f32 to vector<8x256xf32>
    %7 = arith.minimumf %6, %5 : vector<8x256xf32>
    %c0_3 = arith.constant 0 : index
    %c0_4 = arith.constant 0 : index
    %8 = vector.load %arg2[%c0_3, %c0_4] : memref<8x256xf32, #tpu.memory_space<vmem>>, vector<8x256xf32>
    tpu.vector_store %arg2[%c0_3, %c0_4], %7 {strides = array<i32>} : memref<8x256xf32, #tpu.memory_space<vmem>>, vector<8x256xf32>,
    return
  }
  func.func @transform_0(%arg0: i32) -> (i32, i32) {
    %c0_i32 = arith.constant 0 : i32
    %c0_i32_0 = arith.constant 0 : i32
    return %arg0, %c0_i32 : i32, i32
  }
  func.func @transform_1(%arg0: i32) -> (i32, i32) {
    %c0_i32 = arith.constant 0 : i32
    %c0_i32_0 = arith.constant 0 : i32
    return %arg0, %c0_i32 : i32, i32
  }
}

</mosaic_0001>

<bundles_post_ra>
// kernel: _lrelu_impl.1
= control target key start
LH: loop header
LB: loop body
LE: loop exit
PB: predicated region body
PF: predicated region fallthrough
CT: control target
= control target key end

     0   :  { %s48_s0 = inlined_call_operand.vmem [shape: f32[8,256], index: 0, kind: input, shape index: {}]   ;;  %s49_s1 = inlined_call_operand.vmem [shape: f32[8,256], index: 1, kind: output, shape index: {}]  }
   0x1   :  { %v8_v0 = vld [vmem:[%s48_s0] sm:$0xff]  ;;  %v9_v1 = vld [vmem:[%s48_s0 + $0x8] sm:$0xff] }
   0x2   :  { %v10_v2 = vmul.f32 0.33333334, %v8_v0  ;;  %v11_v3 = vmul.f32 0.33333334, %v9_v1 }
   0x4   :  { %v12_v4 = vmax.f32 %v8_v0, %v10_v2  ;;  %v13_v5 = vmax.f32 %v9_v1, %v11_v3 }
   0x6   :  { %v24_v6 = vclamps-f32 %v12_v4, 3.0  ;;  %v25_v7 = vclamps-f32 %v13_v5, 3.0 }
   0x8   :  { %18 = vst [vmem:[%s49_s1] sm:$0xff] %v24_v6  ;;  %19 = vst [vmem:[%s49_s1 + $0x8] sm:$0xff] %v25_v7 }

</bundles_post_ra>
